<compile_context>
chip_gen: v7x
topology: tpu7x:2x2x1
jax: 0.10.0
libtpu: 0.0.40
codegen_flags: <defaults>
</compile_context>

<pallas_src>
import functools
import math

import jax
import jax.numpy as jnp
from jax.experimental import pallas as pl
from jax.experimental.pallas import tpu as pltpu

EPS = 1e-6                       # RMSNorm eps
MASK_VALUE = -1000.0             # OctreeT.invalid_mask_value


# ----------------------- per-generation sizing helpers -----------------------

def _vmem_limit_bytes():
    cap = None
    try:
        info = pltpu.get_tpu_info()
        cap = getattr(info, "vmem_capacity_bytes", None)
    except Exception:
        cap = None
    if not cap:
        return 48 * 1024 * 1024          # safe everywhere (v7x has 64 MiB/TC)
    return int(cap) * 3 // 4             # leave headroom for compiler scratch


_VMEM_LIMIT = _vmem_limit_bytes()
ROW_TILE = 512 if _VMEM_LIMIT >= 80 * 1024 * 1024 else 256


def _cparams(n_parallel):
    return pltpu.CompilerParams(
        dimension_semantics=("parallel",) * n_parallel,
        vmem_limit_bytes=_VMEM_LIMIT)


def _probe_kernel(x_ref, o_ref):
    o_ref[...] = x_ref[...]


@functools.lru_cache(maxsize=None)
def _buffered_one_supported():
    """Single-buffered (Buffered(1)) constant blocks, probed once for safety."""
    try:
        spec = pl.BlockSpec((8, 128), lambda i: (0, 0), pipeline_mode=pl.Buffered(1))
        fn = pl.pallas_call(
            _probe_kernel,
            out_shape=jax.ShapeDtypeStruct((8, 128), jnp.float32),
            grid=(1,),
            in_specs=[spec],
            out_specs=pl.BlockSpec((8, 128), lambda i: (0, 0)))
        jax.block_until_ready(fn(jnp.zeros((8, 128), jnp.float32)))
        return True
    except Exception:
        return False


def _const_spec(shape):
    """BlockSpec for grid-invariant operands (weights/bias/gamma)."""
    nd = len(shape)
    idx = lambda *_: (0,) * nd
    if _buffered_one_supported():
        return pl.BlockSpec(shape, idx, pipeline_mode=pl.Buffered(1))
    return pl.BlockSpec(shape, idx)


def _gelu_tanh(x):
    # TODO(synk): torch.nn.GELU default is erf-based; tanh approximation used
    # here (erf lowering inside Mosaic kernels is not guaranteed).
    return 0.5 * x * (1.0 + jnp.tanh(0.7978845608028654 * (x + 0.044715 * x * x * x)))


# ----------------------------- Pallas kernels -------------------------------

def _linear_residual_kernel(x_ref, w_ref, b_ref, r_ref, o_ref):
    # out = residual + (x @ w + b)
    x = x_ref[...].astype(jnp.bfloat16)
    acc = jnp.dot(x, w_ref[...], preferred_element_type=jnp.float32)
    o_ref[...] = (acc + b_ref[...] + r_ref[...].astype(jnp.float32)).astype(o_ref.dtype)


def _rmsnorm_linear_kernel(x_ref, g_ref, w_ref, b_ref, o_ref):
    x = x_ref[...].astype(jnp.float32)
    ms = jnp.mean(x * x, axis=-1, keepdims=True)
    xn = (x * jax.lax.rsqrt(ms + EPS) * g_ref[...]).astype(jnp.bfloat16)
    acc = jnp.dot(xn, w_ref[...], preferred_element_type=jnp.float32)
    o_ref[...] = (acc + b_ref[...]).astype(o_ref.dtype)


def _rmsnorm_mlp_kernel(x_ref, g_ref, w1_ref, b1_ref, w2_ref, b2_ref, o_ref):
    # out = x + fc2(gelu(fc1(rmsnorm(x))))   -- residual fused (reuses x)
    x = x_ref[...].astype(jnp.float32)
    ms = jnp.mean(x * x, axis=-1, keepdims=True)
    xn = (x * jax.lax.rsqrt(ms + EPS) * g_ref[...]).astype(jnp.bfloat16)
    h = jnp.dot(xn, w1_ref[...], preferred_element_type=jnp.float32) + b1_ref[...]
    h = _gelu_tanh(h).astype(jnp.bfloat16)
    acc = jnp.dot(h, w2_ref[...], preferred_element_type=jnp.float32)
    o_ref[...] = (acc + b2_ref[...] + x).astype(o_ref.dtype)


def _window_attn_kernel(qkv_ref, b_ref, d_ref, o_ref, *, num_heads, scale):
    # one chunk of W windows, all heads, per grid step
    c = o_ref.shape[-1]
    hd = c // num_heads
    qkv = qkv_ref[...]                          # (W, K, 3C) bf16
    bi = b_ref[...][:, 0, :]                    # (W, K) int32 batch rows
    di = d_ref[...][:, 0, :]                    # (W, K) int32 depth rows

    # additive mask built on-chip from the two index rows (VPU compares only)
    neq = ((bi[:, :, None] != bi[:, None, :]) |
           (bi[:, :, None] == -1) | (bi[:, None, :] == -1))
    lt = ((di[:, :, None] < di[:, None, :]) |
          (di[:, :, None] == -1) | (di[:, None, :] == -1))
    m = (jnp.where(neq, MASK_VALUE, 0.0) +
         jnp.where(lt, MASK_VALUE, 0.0)).astype(jnp.float32)   # (W, K, K)

    for h in range(num_heads):                  # static unrolled loop over heads
        q = qkv[:, :, h * hd:(h + 1) * hd]
        k = qkv[:, :, c + h * hd: c + (h + 1) * hd]
        v = qkv[:, :, 2 * c + h * hd: 2 * c + (h + 1) * hd]
        s = jnp.einsum('wqd,wkd->wqk', q, k,
                       preferred_element_type=jnp.float32) * scale + m
        s = s - jnp.max(s, axis=-1, keepdims=True)
        p = jnp.exp(s)
        l = jnp.sum(p, axis=-1, keepdims=True)
        o = jnp.einsum('wqk,wkd->wqd', p.astype(jnp.bfloat16), v,
                       preferred_element_type=jnp.float32)
        # per-head slice store: intermediates (s, p, o) die each iteration
        o_ref[:, :, h * hd:(h + 1) * hd] = (
            o * pl.reciprocal(l, approx=True)).astype(o_ref.dtype)


# ------------------------------ Pallas wrappers ------------------------------

def _pad_rows(x, tile):
    m = x.shape[0]
    mp = pl.cdiv(m, tile) * tile
    if mp != m:
        x = jnp.pad(x, ((0, mp - m), (0, 0)))
    return x, m


def pallas_linear_residual(x, w, b, res, out_dtype=jnp.float32):
    kin = x.shape[1]
    nout = w.shape[1]
    xp, m = _pad_rows(x, ROW_TILE)
    rp, _ = _pad_rows(res, ROW_TILE)
    mp = xp.shape[0]
    out = pl.pallas_call(
        _linear_residual_kernel,
        out_shape=jax.ShapeDtypeStruct((mp, nout), out_dtype),
        grid=(mp // ROW_TILE,),
        in_specs=[pl.BlockSpec((ROW_TILE, kin), lambda i: (i, 0)),
                  _const_spec((kin, nout)),
                  _const_spec((1, nout)),
                  pl.BlockSpec((ROW_TILE, nout), lambda i: (i, 0))],
        out_specs=pl.BlockSpec((ROW_TILE, nout), lambda i: (i, 0)),
        compiler_params=_cparams(1),
    )(xp, w, b.reshape(1, -1), rp)
    return out[:m]


def pallas_norm_linear(x, g, w, b, out_dtype=jnp.float32):
    kin = x.shape[1]
    nout = w.shape[1]
    xp, m = _pad_rows(x, ROW_TILE)
    mp = xp.shape[0]
    out = pl.pallas_call(
        _rmsnorm_linear_kernel,
        out_shape=jax.ShapeDtypeStruct((mp, nout), out_dtype),
        grid=(mp // ROW_TILE,),
        in_specs=[pl.BlockSpec((ROW_TILE, kin), lambda i: (i, 0)),
                  _const_spec((1, kin)),
                  _const_spec((kin, nout)),
                  _const_spec((1, nout))],
        out_specs=pl.BlockSpec((ROW_TILE, nout), lambda i: (i, 0)),
        compiler_params=_cparams(1),
    )(xp, g.reshape(1, -1), w, b.reshape(1, -1))
    return out[:m]


def pallas_norm_mlp(x, g, w1, b1, w2, b2, out_dtype=jnp.float32):
    kin = x.shape[1]
    hid = w1.shape[1]
    nout = w2.shape[1]
    xp, m = _pad_rows(x, ROW_TILE)
    mp = xp.shape[0]
    out = pl.pallas_call(
        _rmsnorm_mlp_kernel,
        out_shape=jax.ShapeDtypeStruct((mp, nout), out_dtype),
        grid=(mp // ROW_TILE,),
        in_specs=[pl.BlockSpec((ROW_TILE, kin), lambda i: (i, 0)),
                  _const_spec((1, kin)),
                  _const_spec((kin, hid)),
                  _const_spec((1, hid)),
                  _const_spec((hid, nout)),
                  _const_spec((1, nout))],
        out_specs=pl.BlockSpec((ROW_TILE, nout), lambda i: (i, 0)),
        compiler_params=_cparams(1),
    )(xp, g.reshape(1, -1), w1, b1.reshape(1, -1), w2, b2.reshape(1, -1))
    return out[:m]


def pallas_window_attention(qkv, bidx, didx, num_heads, scale, out_dtype=jnp.bfloat16):
    # qkv: (P, K, 3C) bf16, bidx/didx: (P, K) int window rows -> (P, K, C)
    p_, kp, c3 = qkv.shape
    c = c3 // 3
    # fold several windows per grid step so the MXU sees a reasonable LHS
    w = max(1, min(p_, max(1, ROW_TILE // kp)))
    ppad = pl.cdiv(p_, w) * w
    if ppad != p_:
        qkv = jnp.pad(qkv, ((0, ppad - p_), (0, 0), (0, 0)))
        bidx = jnp.pad(bidx, ((0, ppad - p_), (0, 0)))
        didx = jnp.pad(didx, ((0, ppad - p_), (0, 0)))
    bidx = bidx.reshape(ppad, 1, kp).astype(jnp.int32)
    didx = didx.reshape(ppad, 1, kp).astype(jnp.int32)
    kern = functools.partial(_window_attn_kernel, num_heads=num_heads, scale=scale)
    out = pl.pallas_call(
        kern,
        out_shape=jax.ShapeDtypeStruct((ppad, kp, c), out_dtype),
        grid=(ppad // w,),
        in_specs=[pl.BlockSpec((w, kp, c3), lambda i: (i, 0, 0)),
                  pl.BlockSpec((w, 1, kp), lambda i: (i, 0, 0)),
                  pl.BlockSpec((w, 1, kp), lambda i: (i, 0, 0))],
        out_specs=pl.BlockSpec((w, kp, c), lambda i: (i, 0, 0)),
        compiler_params=_cparams(1),
    )(qkv, bidx, didx)
    return out[:p_]


PALLAS_OPS = dict(norm_linear=pallas_norm_linear, linear_residual=pallas_linear_residual,
                  norm_mlp=pallas_norm_mlp, attn=pallas_window_attention)


# --------------------------- pure-JAX reference ops --------------------------
# References mirror the kernel dtype handling (bf16 matmul operands, f32 accum,
# fused residuals) so the correctness check is apples-to-apples.

def _ref_norm(x, g):
    x = x.astype(jnp.float32)
    return x * jax.lax.rsqrt(jnp.mean(x * x, -1, keepdims=True) + EPS) * g


def _ref_linear_residual(x, w, b, res, out_dtype=jnp.float32):
    acc = jnp.dot(x.astype(jnp.bfloat16), w, preferred_element_type=jnp.float32)
    return (acc + b + res.astype(jnp.float32)).astype(out_dtype)


def _ref_norm_linear(x, g, w, b, out_dtype=jnp.float32):
    xn = _ref_norm(x, g).astype(jnp.bfloat16)
    acc = jnp.dot(xn, w, preferred_element_type=jnp.float32)
    return (acc + b).astype(out_dtype)


def _ref_norm_mlp(x, g, w1, b1, w2, b2, out_dtype=jnp.float32):
    xn = _ref_norm(x, g).astype(jnp.bfloat16)
    h = jnp.dot(xn, w1, preferred_element_type=jnp.float32) + b1
    h = _gelu_tanh(h).astype(jnp.bfloat16)
    acc = jnp.dot(h, w2, preferred_element_type=jnp.float32)
    return (acc + b2 + x.astype(jnp.float32)).astype(out_dtype)


def _ref_attn(qkv, bidx, didx, num_heads, scale, out_dtype=jnp.bfloat16):
    p_, kp, c3 = qkv.shape
    c = c3 // 3
    hd = c // num_heads
    neq = ((bidx[:, :, None] != bidx[:, None, :]) |
           (bidx[:, :, None] == -1) | (bidx[:, None, :] == -1))
    lt = ((didx[:, :, None] < didx[:, None, :]) |
          (didx[:, :, None] == -1) | (didx[:, None, :] == -1))
    mask = (jnp.where(neq, MASK_VALUE, 0.0) +
            jnp.where(lt, MASK_VALUE, 0.0)).astype(jnp.float32)
    qkv = qkv.astype(jnp.bfloat16)
    q = qkv[..., :c].reshape(p_, kp, num_heads, hd).transpose(0, 2, 1, 3)
    k = qkv[..., c:2 * c].reshape(p_, kp, num_heads, hd).transpose(0, 2, 1, 3)
    v = qkv[..., 2 * c:].reshape(p_, kp, num_heads, hd).transpose(0, 2, 1, 3)
    s = jnp.einsum('phqd,phkd->phqk', q, k,
                   preferred_element_type=jnp.float32) * scale + mask[:, None]
    s = s - jnp.max(s, -1, keepdims=True)
    p = jnp.exp(s)
    l = jnp.sum(p, -1, keepdims=True)
    o = jnp.einsum('phqk,phkd->phqd', p.astype(jnp.bfloat16), v,
                   preferred_element_type=jnp.float32) / l
    return o.transpose(0, 2, 1, 3).reshape(p_, kp, c).astype(out_dtype)


REF_OPS = dict(norm_linear=_ref_norm_linear, linear_residual=_ref_linear_residual,
               norm_mlp=_ref_norm_mlp, attn=_ref_attn)


# ------------------------------- OctreeT glue --------------------------------

def build_octree(patch_size, dilation, batch_idx, depth_idx, xyz):
    n = batch_idx.shape[0]
    block_num = patch_size * dilation
    npad = int(math.ceil(n / block_num) * block_num)
    # patch_partition: batch padded with fill = batch_size, depth with max+1
    bpad = jnp.concatenate(
        [batch_idx, jnp.full((npad - n,), int(batch_idx.max()) + 1, batch_idx.dtype)])
    dpad = jnp.concatenate(
        [depth_idx, jnp.full((npad - n,), int(depth_idx.max()) + 1, depth_idx.dtype)])

    def dilate(v):
        return v.reshape(-1, patch_size, dilation).transpose(0, 2, 1).reshape(-1, patch_size)

    # Window-shaped integer index rows: (P, K). The (P, K, K) additive masks are
    # built on-chip inside the attention kernel from these rows.
    return dict(
        patch_size=patch_size, dilation=dilation, n=n, npad=npad, xyz=xyz,
        patch_batch=bpad.reshape(-1, patch_size).astype(jnp.int32),
        patch_depth=dpad.reshape(-1, patch_size).astype(jnp.int32),
        dilate_batch=dilate(bpad).astype(jnp.int32),
        dilate_depth=dilate(dpad).astype(jnp.int32),
    )


# ------------------------------ OctFormer model -------------------------------

def init_block_params(key, dim, mlp_ratio=4.0):
    hidden = int(dim * mlp_ratio)
    ks = jax.random.split(key, 10)
    w = lambda k, s: 0.02 * jax.random.normal(k, s, jnp.float32)
    wb = lambda k, s: w(k, s).astype(jnp.bfloat16)       # hot-path weights in bf16
    return dict(
        # TODO(synk): AbsPosEmb definition not provided; approximated as a
        # learned Linear(3 -> dim) applied to octree.xyz.
        w_pe=w(ks[0], (3, dim)), b_pe=w(ks[1], (dim,)),
        g1=jnp.ones((dim,), jnp.float32),
        w_qkv=wb(ks[2], (dim, 3 * dim)), b_qkv=w(ks[3], (3 * dim,)),
        w_proj=wb(ks[4], (dim, dim)), b_proj=w(ks[5], (dim,)),
        g2=jnp.ones((dim,), jnp.float32),
        w1=wb(ks[6], (dim, hidden)), b1=w(ks[7], (hidden,)),
        w2=wb(ks[8], (hidden, dim)), b2=w(ks[9], (dim,)),
    )


def octformer_block(data, params, octree, dilation, num_heads, ops):
    n, c = data.shape
    k = octree['patch_size']
    hd = c // num_heads

    # positional embedding + residual (tiny 3->dim contraction, plain XLA)
    pe = octree['xyz'] @ params['w_pe'] + params['b_pe']
    data = data + pe

    # patch_partition (pad with zeros) + dilation reorder on the C-wide input
    # (row-wise RMSNorm/QKV commute with row permutation; padded rows are
    # masked out in attention and discarded by patch_reverse).
    npad = octree['npad']
    x = jnp.pad(data, ((0, npad - n), (0, 0)))
    if dilation > 1:
        x = x.reshape(-1, k, dilation, c).transpose(0, 2, 1, 3).reshape(-1, c)
        bidx, didx = octree['dilate_batch'], octree['dilate_depth']
    else:
        bidx, didx = octree['patch_batch'], octree['patch_depth']

    # attention branch: RMSNorm + QKV projection (fused kernel, bf16 out)
    qkv = ops['norm_linear'](x, params['g1'], params['w_qkv'], params['b_qkv'],
                             jnp.bfloat16)
    # TODO(synk): RotaryPosEmb (rope_mixed=True) definition not provided; identity.

    qkv_w = qkv.reshape(-1, k, 3 * c)                    # (P, K, 3C) — no head split in HBM
    scale = hd ** (-0.5)
    out = ops['attn'](qkv_w, bidx, didx, num_heads, scale)   # (P, K, C) lane-dense
    out = out.reshape(-1, c)
    if dilation > 1:
        out = out.reshape(-1, dilation, k, c).transpose(0, 2, 1, 3).reshape(-1, c)
    out = out[:n]                                        # patch_reverse

    # output projection with fused residual: data = data + proj(out)
    data = ops['linear_residual'](out, params['w_proj'], params['b_proj'], data,
                                  jnp.float32)

    # MLP branch with fused residual: data = data + fc2(gelu(fc1(rmsnorm(data))))
    data = ops['norm_mlp'](data, params['g2'], params['w1'], params['b1'],
                           params['w2'], params['b2'], jnp.float32)
    return data


def octformer_forward(data, blocks_params, octree, num_heads, dilation, ops):
    # dropout layers are no-ops in eval mode; use_ctx=False, use_swin=False.
    for i, p in enumerate(blocks_params):
        d = 1 if i % 2 == 0 else dilation
        data = octformer_block(data, p, octree, d, num_heads, ops)
    return data


# ----------------------------------- main ------------------------------------

if __name__ == "__main__":
    # small config (defaults are 768 / 24 / 8 / 1024 / 8 — scaled down here)
    channels, num_blocks, num_heads = 32, 2, 4
    patch_size, dilation = 8, 2

    key = jax.random.PRNGKey(0)
    k_data, k_xyz, k_params = jax.random.split(key, 3)

    # synthetic octree token metadata: 2 batches, 3 depth levels, N = 56 tokens
    batch_idx = jnp.concatenate([jnp.zeros(24, jnp.int32), jnp.ones(32, jnp.int32)])
    depth_idx = jnp.array([0] * 4 + [1] * 8 + [2] * 12 +       # batch 0
                          [0] * 4 + [1] * 12 + [2] * 16,       # batch 1
                          dtype=jnp.int32)
    n_tokens = int(batch_idx.shape[0])
    xyz = jax.random.uniform(k_xyz, (n_tokens, 3), jnp.float32) * 64.0
    data = jax.random.normal(k_data, (n_tokens, channels), jnp.float32)

    octree = build_octree(patch_size, dilation, batch_idx, depth_idx, xyz)

    blocks_params = [init_block_params(k, channels)
                     for k in jax.random.split(k_params, num_blocks)]

    out = octformer_forward(data, blocks_params, octree, num_heads, dilation, PALLAS_OPS)
    out = jax.block_until_ready(out)

    ref = octformer_forward(data, blocks_params, octree, num_heads, dilation, REF_OPS)
    ref = jax.block_until_ready(ref)

    assert out.shape == (n_tokens, channels)
    assert jnp.allclose(out, ref, atol=3e-2, rtol=3e-2), "mismatch vs JAX reference"
    print("KERNEL_OK")
</pallas_src>

<mosaic_0001>
module attributes {stable_mosaic.version = 11 : i64} {
  func.func @_probe_kernel(%arg0: i32, %arg1: memref<8x128xf32, #tpu.memory_space<vmem>>, %arg2: memref<8x128xf32, #tpu.memory_space<vmem>>) attributes {dimension_semantics = [#tpu.dimension_semantics<arbitrary>], iteration_bounds = array<i64: 1>, scalar_prefetch = 0 : i64, scratch_operands = 0 : i64, tpu.core_type = #tpu.core_type<tc>, window_params = [{pipeline_mode = #tpu.pipeline_mode<synchronous>, transform_indices = @transform_0, window_bounds = array<i64: 8, 128>}, {pipeline_mode = #tpu.pipeline_mode<synchronous>, transform_indices = @transform_1, window_bounds = array<i64: 8, 128>}]} {
    %c0 = arith.constant 0 : index
    %c0_0 = arith.constant 0 : index
    %0 = vector.load %arg1[%c0, %c0_0] : memref<8x128xf32, #tpu.memory_space<vmem>>, vector<8x128xf32>
    %c0_1 = arith.constant 0 : index
    %c0_2 = arith.constant 0 : index
    %1 = vector.load %arg2[%c0_1, %c0_2] : memref<8x128xf32, #tpu.memory_space<vmem>>, vector<8x128xf32>
    tpu.vector_store %arg2[%c0_1, %c0_2], %0 {strides = array<i32>} : memref<8x128xf32, #tpu.memory_space<vmem>>, vector<8x128xf32>,
    return
  }
  func.func @transform_0(%arg0: i32) -> (i32, i32) {
    %c0_i32 = arith.constant 0 : i32
    %c0_i32_0 = arith.constant 0 : i32
    %c0_i32_1 = arith.constant 0 : i32
    return %c0_i32, %c0_i32_0 : i32, i32
  }
  func.func @transform_1(%arg0: i32) -> (i32, i32) {
    %c0_i32 = arith.constant 0 : i32
    %c0_i32_0 = arith.constant 0 : i32
    %c0_i32_1 = arith.constant 0 : i32
    return %c0_i32, %c0_i32_0 : i32, i32
  }
}

module attributes {stable_mosaic.version = 11 : i64} {
  func.func @_rmsnorm_linear_kernel(%arg0: i32, %arg1: memref<256x32xf32, #tpu.memory_space<vmem>>, %arg2: memref<1x32xf32, #tpu.memory_space<vmem>>, %arg3: memref<32x96xbf16, #tpu.memory_space<vmem>>, %arg4: memref<1x96xf32, #tpu.memory_space<vmem>>, %arg5: memref<256x96xbf16, #tpu.memory_space<vmem>>) attributes {dimension_semantics = [#tpu.dimension_semantics<parallel>], iteration_bounds = array<i64: 1>, scalar_prefetch = 0 : i64, scratch_operands = 0 : i64, tpu.core_type = #tpu.core_type<tc>, window_params = [{transform_indices = @transform_0, window_bounds = array<i64: 256, 32>}, {pipeline_mode = #tpu.pipeline_mode<synchronous>, transform_indices = @transform_1, window_bounds = array<i64: 1, 32>}, {pipeline_mode = #tpu.pipeline_mode<synchronous>, transform_indices = @transform_2, window_bounds = array<i64: 32, 96>}, {pipeline_mode = #tpu.pipeline_mode<synchronous>, transform_indices = @transform_3, window_bounds = array<i64: 1, 96>}, {transform_indices = @transform_4, window_bounds = array<i64: 256, 96>}]} {
    %c0 = arith.constant 0 : index
    %c0_0 = arith.constant 0 : index
    %0 = vector.load %arg1[%c0, %c0_0] : memref<256x32xf32, #tpu.memory_space<vmem>>, vector<256x32xf32>
    %1 = arith.mulf %0, %0 : vector<256x32xf32>
    %cst = arith.constant dense<0.000000e+00> : vector<256xf32>
    %2 = vector.multi_reduction <add>, %1, %cst [1] : vector<256x32xf32> to vector<256xf32>
    %3 = vector.shape_cast %2 : vector<256xf32> to vector<256x1xf32>
    %cst_1 = arith.constant 3.200000e+01 : f32
    %4 = vector.broadcast %cst_1 : f32 to vector<256x1xf32>
    %5 = arith.divf %3, %4 : vector<256x1xf32>
    %cst_2 = arith.constant 9.99999997E-7 : f32
    %6 = vector.broadcast %cst_2 : f32 to vector<256x1xf32>
    %7 = arith.addf %5, %6 : vector<256x1xf32>
    %8 = math.rsqrt %7 : vector<256x1xf32>
    %9 = vector.broadcast %8 : vector<256x1xf32> to vector<256x32xf32>
    %10 = arith.mulf %0, %9 : vector<256x32xf32>
    %c0_3 = arith.constant 0 : index
    %c0_4 = arith.constant 0 : index
    %11 = vector.load %arg2[%c0_3, %c0_4] : memref<1x32xf32, #tpu.memory_space<vmem>>, vector<1x32xf32>
    %12 = vector.broadcast %11 : vector<1x32xf32> to vector<256x32xf32>
    %13 = arith.mulf %10, %12 : vector<256x32xf32>
    %14 = arith.truncf %13 : vector<256x32xf32> to vector<256x32xbf16>
    %c0_5 = arith.constant 0 : index
    %c0_6 = arith.constant 0 : index
    %15 = vector.load %arg3[%c0_5, %c0_6] : memref<32x96xbf16, #tpu.memory_space<vmem>>, vector<32x96xbf16>
    %cst_7 = arith.constant dense<0.000000e+00> : vector<256x96xf32>
    %16 = tpu.matmul %14, %15, %cst_7 {dimension_numbers = #tpu.dot_dimension_numbers<[1], [0], [0], [1], [0, 0, 1, 1], [], []>} : vector<256x32xbf16>, vector<32x96xbf16>, vector<256x96xf32> -> vector<256x96xf32>
    %c0_8 = arith.constant 0 : index
    %c0_9 = arith.constant 0 : index
    %17 = vector.load %arg4[%c0_8, %c0_9] : memref<1x96xf32, #tpu.memory_space<vmem>>, vector<1x96xf32>
    %18 = vector.broadcast %17 : vector<1x96xf32> to vector<256x96xf32>
    %19 = arith.addf %16, %18 : vector<256x96xf32>
    %20 = arith.truncf %19 : vector<256x96xf32> to vector<256x96xbf16>
    %c0_10 = arith.constant 0 : index
    %c0_11 = arith.constant 0 : index
    %21 = vector.load %arg5[%c0_10, %c0_11] : memref<256x96xbf16, #tpu.memory_space<vmem>>, vector<256x96xbf16>
    tpu.vector_store %arg5[%c0_10, %c0_11], %20 {strides = array<i32>} : memref<256x96xbf16, #tpu.memory_space<vmem>>, vector<256x96xbf16>,
    return
  }
  func.func @transform_0(%arg0: i32) -> (i32, i32) {
    %c0_i32 = arith.constant 0 : i32
    %c0_i32_0 = arith.constant 0 : i32
    return %arg0, %c0_i32 : i32, i32
  }
  func.func @transform_1(%arg0: i32) -> (i32, i32) {
    %c0_i32 = arith.constant 0 : i32
    %c0_i32_0 = arith.constant 0 : i32
    %c0_i32_1 = arith.constant 0 : i32
    return %c0_i32, %c0_i32_0 : i32, i32
  }
  func.func @transform_2(%arg0: i32) -> (i32, i32) {
    %c0_i32 = arith.constant 0 : i32
    %c0_i32_0 = arith.constant 0 : i32
    %c0_i32_1 = arith.constant 0 : i32
    return %c0_i32, %c0_i32_0 : i32, i32
  }
  func.func @transform_3(%arg0: i32) -> (i32, i32) {
    %c0_i32 = arith.constant 0 : i32
    %c0_i32_0 = arith.constant 0 : i32
    %c0_i32_1 = arith.constant 0 : i32
    return %c0_i32, %c0_i32_0 : i32, i32
  }
  func.func @transform_4(%arg0: i32) -> (i32, i32) {
    %c0_i32 = arith.constant 0 : i32
    %c0_i32_0 = arith.constant 0 : i32
    return %arg0, %c0_i32 : i32, i32
  }
}

</mosaic_0001>

<bundles_post_ra>
// kernel: tpu_custom_call.1
= control target key start
LH: loop header
LB: loop body
LE: loop exit
PB: predicated region body
PF: predicated region fallthrough
CT: control target
= control target key end

     0   :  { %6 = vsyncpa [#allocation3], 0  ;;  %s124_s0 = inlined_call_operand.hbm [shape: f32[8,128], index: 0, kind: input, shape index: {}]   ;;  %s125_s1 = inlined_call_operand.hbm [shape: f32[8,128], index: 1, kind: output, shape index: {}]  }
   0x1   :  { %7 = vsyncpa [#allocation4], 0  ;;  %s88_s6 = smov [#allocation2]   ;;  %s40_s10 = scalar_lea.hbm %s124_s0, 128 }
   0x2   :  { %s14_s7 = sshll.u32 %s88_s6, 4  ;;  %p41_p0 = scmp.ne.s32.totalorder %s124_s0, %s40_s10  ;;  %s15_s7 = int_to_ptr.vmem [resolvable:$true] %s14_s7 }
   0x3   :  { %p44_p1 = scmp.lt.u32.totalorder %s40_s10, %s124_s0 }
   0x5   :  { %p46_p2 = pnand %p44_p1, %p41_p0 }
   0x7   :  { %49 = shalt.err (!%p46_p2)
}
   0x8   :  { %s50_s15 = scalar_lea.vmem %s15_s7, 128  ;;  %p55_p4 = scmp.lt.s32.totalorder %s15_s7, %s15_s7 }
   0x9   :  { %p51_p3 = scmp.ne.s32.totalorder %s15_s7, %s50_s15  ;;  %p56_p5 = scmp.lt.s32.totalorder %s50_s15, %s50_s15 }
   0xb   :  { %p57_p6 = por %p56_p5, %p55_p4 }
   0xd   :  { %p58_p7 = pnand %p57_p6, %p51_p3 }
   0xf   :  { %61 = shalt.err (!%p58_p7)
}
  0x10   :  { %17 = dma.hbm_to_vmem [thread:$0]  %s124_s0, 128, %s15_s7, [#allocation3]  }
  0x11   :  { %84 = dma.done.wait [#allocation3], 128  }
  0x12   :  { %85 = vsyncadd [#allocation3], 4294967168  ;;  %s89_s18 = smov [#allocation5]   ;;  %v21_v0 = vld [vmem:[#allocation2] sm:$0xff] }
  0x13   :  { %s29_s19 = sshll.u32 %s89_s18, 4  ;;  %22 = vst [vmem:[#allocation5] sm:$0xff] %v21_v0  ;;  %s30_s19 = int_to_ptr.vmem [resolvable:$true] %s29_s19 }
  0x14   :  { %s62_s20 = scalar_lea.vmem %s30_s19, 128  ;;  %p67_p9 = scmp.lt.s32.totalorder %s30_s19, %s30_s19 }
  0x15   :  { %p63_p8 = scmp.ne.s32.totalorder %s30_s19, %s62_s20  ;;  %p68_p10 = scmp.lt.s32.totalorder %s62_s20, %s62_s20 }
  0x17   :  { %p69_p11 = por %p68_p10, %p67_p9 }
  0x19   :  { %p70_p12 = pnand %p69_p11, %p63_p8 }
  0x1b   :  { %73 = shalt.err (!%p70_p12)
}
  0x1c   :  { %s74_s23 = scalar_lea.hbm %s125_s1, 128 }
  0x1d   :  { %p75_p13 = scmp.ne.s32.totalorder %s125_s1, %s74_s23  ;;  %p78_p0 = scmp.lt.u32.totalorder %s74_s23, %s125_s1 }
  0x1f   :  { %p80_p1 = pnand %p78_p0, %p75_p13 }
  0x21   :  { %83 = shalt.err (!%p80_p1)
}
  0x22   :  { %32 = dma.vmem_to_hbm [thread:$0]  %s30_s19, 128, %s125_s1, [#allocation4]  }
  0x23   :  { %86 = dma.done.wait [#allocation4], 128  }
  0x24   :  { %87 = vsyncadd [#allocation4], 4294967168 }
  0x25   :  { %36 = vsyncpa [#allocation3], 1 }
  0x26   :  { %37 = vsyncpa [#allocation4], 1 }

// kernel: tpu_custom_call.1
= control target key start
LH: loop header
LB: loop body
LE: loop exit
PB: predicated region body
PF: predicated region fallthrough
CT: control target
= control target key end

     0   :  { %vm82_vm0 = vcmask 261120   ;;  %vm723_vm1 = vcmask 781312   ;;  %s1505_s0 = inlined_call_operand.vmem [shape: f32[256,32], index: 0, kind: input, shape index: {}]   ;;  %s1506_s2 = inlined_call_operand.vmem [shape: bf16[32,96], index: 2, kind: input, shape index: {}]   ;;  %s1507_s1 = inlined_call_operand.vmem [shape: f32[1,32], index: 1, kind: input, shape index: {}]   ;;  %s1508_s3 = inlined_call_operand.vmem [shape: f32[1,96], index: 3, kind: input, shape index: {}]   ;;  %s1509_s4 = inlined_call_operand.vmem [shape: bf16[256,96], index: 4, kind: output, shape index: {}]  }
   0x1   :  { %v996_v0 = vld [vmem:[%s1505_s0 + $0x80] sm:$0xff]  ;;  %v1006_v2 = vld [vmem:[%s1505_s0 + $0x88] sm:$0xff]  ;;  %v1024_v8 = vld [vmem:[%s1505_s0 + $0x18] sm:$0xff] }
   0x2   :  { %v1001_v1 = vld [vmem:[%s1505_s0] sm:$0xff]  ;;  %v66_v3 = vmul.f32 %v996_v0, %v996_v0  ;;  %v67_v5 = vmul.f32 %v1006_v2, %v1006_v2  ;;  %v1017_v6 = vld [vmem:[%s1505_s0 + $0x8] sm:$0xff]  ;;  %v1029_v9 = vld [vmem:[%s1505_s0 + $0x10] sm:$0xff]  ;;  %v53_v14 = vmul.f32 %v1024_v8, %v1024_v8 }
   0x3   :  { %v50_v4 = vmul.f32 %v1001_v1, %v1001_v1  ;;  %v51_v7 = vmul.f32 %v1017_v6, %v1017_v6  ;;  %v52_v15 = vmul.f32 %v1029_v9, %v1029_v9  ;;  %v1042_v16 = vld [vmem:[%s1505_s0 + $0x98] sm:$0xff]  ;;  %v1047_v17 = vld [vmem:[%s1505_s0 + $0x90] sm:$0xff]  ;;  %v1058_v22 = vld [vmem:[%s1505_s0 + $0x28] sm:$0xff] }
   0x4   :  { %v131_v10 = vsel %vm82_vm0, %v66_v3, 0.0  ;;  %v134_v12 = vsel %vm82_vm0, %v67_v5, 0.0  ;;  %v92_v18 = vsel %vm82_vm0, %v53_v14, 0.0  ;;  %v69_v20 = vmul.f32 %v1042_v16, %v1042_v16  ;;  %v1063_v23 = vld [vmem:[%s1505_s0 + $0x20] sm:$0xff]  ;;  %v1074_v28 = vld [vmem:[%s1505_s0 + $0xa8] sm:$0xff]  ;;  %v1090_v34 = vld [vmem:[%s1505_s0 + $0x38] sm:$0xff] }
   0x5   :  { %v83_v11 = vsel %vm82_vm0, %v50_v4, 0.0  ;;  %132 = vadd.xlane.f32.xlu1 %v131_v10  ;;  %v86_v13 = vsel %vm82_vm0, %v51_v7, 0.0  ;;  %v89_v19 = vsel %vm82_vm0, %v52_v15, 0.0  ;;  %v68_v21 = vmul.f32 %v1047_v17, %v1047_v17  ;;  %v1079_v29 = vld [vmem:[%s1505_s0 + $0xa0] sm:$0xff]  ;;  %v1095_v35 = vld [vmem:[%s1505_s0 + $0x30] sm:$0xff]  ;;  %v1106_v40 = vld [vmem:[%s1505_s0 + $0xb8] sm:$0xff] }
   0x6   :  { %84 = vadd.xlane.f32.xlu0 %v83_v11  ;;  %v140_v24 = vsel %vm82_vm0, %v69_v20, 0.0  ;;  %v55_v26 = vmul.f32 %v1058_v22, %v1058_v22  ;;  %v54_v27 = vmul.f32 %v1063_v23, %v1063_v23  ;;  %v71_v32 = vmul.f32 %v1074_v28, %v1074_v28  ;;  %v1111_v41 = vld [vmem:[%s1505_s0 + $0xb0] sm:$0xff]  ;;  %v1122_v46 = vld [vmem:[%s1505_s0 + $0x48] sm:$0xff]  ;;  %v1127_v47 = vld [vmem:[%s1505_s0 + $0x40] sm:$0xff] }
   0x7   :  { %v137_v25 = vsel %vm82_vm0, %v68_v21, 0.0  ;;  %v70_v33 = vmul.f32 %v1079_v29, %v1079_v29  ;;  %v57_v38 = vmul.f32 %v1090_v34, %v1090_v34  ;;  %v56_v39 = vmul.f32 %v1095_v35, %v1095_v35  ;;  %v1138_v52 = vld [vmem:[%s1505_s0 + $0xc8] sm:$0xff]  ;;  %v1143_v53 = vld [vmem:[%s1505_s0 + $0xc0] sm:$0xff]  ;;  %v1154_v58 = vld [vmem:[%s1505_s0 + $0x58] sm:$0xff] }
   0x8   :  { %v98_v30 = vsel %vm82_vm0, %v55_v26, 0.0  ;;  %v95_v31 = vsel %vm82_vm0, %v54_v27, 0.0  ;;  %v146_v36 = vsel %vm82_vm0, %v71_v32, 0.0  ;;  %v73_v44 = vmul.f32 %v1106_v40, %v1106_v40  ;;  %v1159_v59 = vld [vmem:[%s1505_s0 + $0x50] sm:$0xff]  ;;  %v1170_v3 = vld [vmem:[%s1505_s0 + $0xd8] sm:$0xff]  ;;  %v902_v5 = vld [vmem:[%s1506_s2] sm:$0xff]  }
   0x9   :  { %135 = vadd.xlane.f32.xlu1 %v134_v12  ;;  %v143_v37 = vsel %vm82_vm0, %v70_v33, 0.0  ;;  %v104_v42 = vsel %vm82_vm0, %v57_v38, 0.0  ;;  %v101_v43 = vsel %vm82_vm0, %v56_v39, 0.0  ;;  %v72_v45 = vmul.f32 %v1111_v41, %v1111_v41  ;;  %v1175_v4 = vld [vmem:[%s1505_s0 + $0xd0] sm:$0xff]  ;;  %862 = vmatprep.subr.bf16.mxu0 %v902_v5  ;;  %v1194_v14 = vld [vmem:[%s1505_s0 + $0x60] sm:$0xff]  ;;  %v903_v15 = vld [vmem:[%s1506_s2 + $0x8] sm:$0xff]  }
   0xa   :  { %87 = vadd.xlane.f32.xlu0 %v86_v13  ;;  %v152_v48 = vsel %vm82_vm0, %v73_v44, 0.0  ;;  %v59_v50 = vmul.f32 %v1122_v46, %v1122_v46  ;;  %v58_v51 = vmul.f32 %v1127_v47, %v1127_v47  ;;  %v75_v56 = vmul.f32 %v1138_v52, %v1138_v52  ;;  %898 = vmatprep.subr.bf16.mxu1 %v902_v5  ;;  %v1189_v13 = vld [vmem:[%s1505_s0 + $0x68] sm:$0xff]  ;;  %v1224_v32 = vld [vmem:[%s1505_s0 + $0x78] sm:$0xff]  ;;  %v1229_v33 = vld [vmem:[%s1505_s0 + $0x70] sm:$0xff] }
   0xb   :  { %v149_v49 = vsel %vm82_vm0, %v72_v45, 0.0  ;;  %v74_v57 = vmul.f32 %v1143_v53, %v1143_v53  ;;  %v61_v62 = vmul.f32 %v1154_v58, %v1154_v58  ;;  %v60_v63 = vmul.f32 %v1159_v59, %v1159_v59  ;;  %863 = vmatpush3.bf16.msra.mxu0 %v902_v5  ;;  %900 = vmatpush3.bf16.msra.mxu1 %v902_v5 }
   0xc   :  { %v110_v54 = vsel %vm82_vm0, %v59_v50, 0.0  ;;  %v107_v55 = vsel %vm82_vm0, %v58_v51, 0.0  ;;  %v158_v60 = vsel %vm82_vm0, %v75_v56, 0.0  ;;  %v77_v11 = vmul.f32 %v1170_v3, %v1170_v3  ;;  %864 = vmatprep.subr.bf16.mxu0 %v903_v15  ;;  %899 = vmatprep.subr.bf16.mxu1 %v903_v15 }
   0xd   :  { %93 = vadd.xlane.f32.xlu1 %v92_v18  ;;  %v155_v61 = vsel %vm82_vm0, %v74_v57, 0.0  ;;  %v116_v7 = vsel %vm82_vm0, %v61_v62, 0.0  ;;  %v113_v10 = vsel %vm82_vm0, %v60_v63, 0.0  ;;  %v76_v12 = vmul.f32 %v1175_v4, %v1175_v4 }
   0xe   :  { %90 = vadd.xlane.f32.xlu0 %v89_v19  ;;  %v164_v18 = vsel %vm82_vm0, %v77_v11, 0.0  ;;  %v63_v20 = vmul.f32 %v1189_v13, %v1189_v13  ;;  %v62_v21 = vmul.f32 %v1194_v14, %v1194_v14  ;;  %v65_v38 = vmul.f32 %v1224_v32, %v1224_v32 }
   0xf   :  { %v161_v19 = vsel %vm82_vm0, %v76_v12, 0.0  ;;  %865 = vmatpush3.bf16.msra.mxu0 %v903_v15  ;;  %901 = vmatpush3.bf16.msra.mxu1 %v903_v15  ;;  %v64_v39 = vmul.f32 %v1229_v33, %v1229_v33 }
  0x10   :  { %v122_v26 = vsel %vm82_vm0, %v63_v20, 0.0  ;;  %v119_v27 = vsel %vm82_vm0, %v62_v21, 0.0  ;;  %v128_v44 = vsel %vm82_vm0, %v65_v38, 0.0 }
  0x11   :  { %141 = vadd.xlane.f32.xlu1 %v140_v24  ;;  %v1208_v24 = vld [vmem:[%s1505_s0 + $0xe8] sm:$0xff]  ;;  %v125_v45 = vsel %vm82_vm0, %v64_v39, 0.0 }
  0x12   :  { %138 = vadd.xlane.f32.xlu0 %v137_v25  ;;  %v1213_v25 = vld [vmem:[%s1505_s0 + $0xe0] sm:$0xff] }
  0x15   :  { %99 = vadd.xlane.f32.xlu1 %v98_v30  ;;  %v79_v30 = vmul.f32 %v1208_v24, %v1208_v24 }
  0x16   :  { %96 = vadd.xlane.f32.xlu0 %v95_v31  ;;  %v78_v31 = vmul.f32 %v1213_v25, %v1213_v25 }
  0x19   :  { %147 = vadd.xlane.f32.xlu1 %v146_v36  ;;  %v170_v36 = vsel %vm82_vm0, %v79_v30, 0.0 }
  0x1a   :  { %144 = vadd.xlane.f32.xlu0 %v143_v37  ;;  %v167_v37 = vsel %vm82_vm0, %v78_v31, 0.0 }
  0x1d   :  { %105 = vadd.xlane.f32.xlu1 %v104_v42  ;;  %v1240_v42 = vld [vmem:[%s1505_s0 + $0xf8] sm:$0xff] }
  0x1e   :  { %102 = vadd.xlane.f32.xlu0 %v101_v43  ;;  %v1245_v43 = vld [vmem:[%s1505_s0 + $0xf0] sm:$0xff] }
  0x21   :  { %153 = vadd.xlane.f32.xlu1 %v152_v48  ;;  %v81_v48 = vmul.f32 %v1240_v42, %v1240_v42 }
  0x22   :  { %150 = vadd.xlane.f32.xlu0 %v149_v49  ;;  %v80_v49 = vmul.f32 %v1245_v43, %v1245_v43 }
  0x23   :  { %v176_v50 = vsel %vm82_vm0, %v81_v48, 0.0 }
  0x24   :  { %v173_v51 = vsel %vm82_vm0, %v80_v49, 0.0 }
  0x25   :  { %111 = vadd.xlane.f32.xlu1 %v110_v54 }
  0x26   :  { %108 = vadd.xlane.f32.xlu0 %v107_v55 }
  0x29   :  { %159 = vadd.xlane.f32.xlu1 %v158_v60 }
  0x2a   :  { %156 = vadd.xlane.f32.xlu0 %v155_v61 }
  0x2d   :  { %117 = vadd.xlane.f32.xlu1 %v116_v7 }
  0x2e   :  { %114 = vadd.xlane.f32.xlu0 %v113_v10 }
  0x31   :  { %165 = vadd.xlane.f32.xlu1 %v164_v18 }
  0x32   :  { %162 = vadd.xlane.f32.xlu0 %v161_v19 }
  0x35   :  { %123 = vadd.xlane.f32.xlu1 %v122_v26 }
  0x36   :  { %120 = vadd.xlane.f32.xlu0 %v119_v27 }
  0x39   :  { %171 = vadd.xlane.f32.xlu1 %v170_v36 }
  0x3a   :  { %168 = vadd.xlane.f32.xlu0 %v167_v37 }
  0x3d   :  { %129 = vadd.xlane.f32.xlu1 %v128_v44 }
  0x3e   :  { %126 = vadd.xlane.f32.xlu0 %v125_v45 }
  0x41   :  { %177 = vadd.xlane.f32.xlu1 %v176_v50 }
  0x42   :  { %174 = vadd.xlane.f32.xlu0 %v173_v51 }
  0x92   :  { %v133_v54 = vpop.xlane.xlu1 %132 }
  0x93   :  { %v85_v55 = vpop.xlane.xlu0 %84  ;;  %v196_v56 = vmul.f32 0.03125, %v133_v54 }
  0x94   :  { %v180_v57 = vmul.f32 0.03125, %v85_v55 }
  0x95   :  { %v228_v60 = vadd.f32 1e-06, %v196_v56 }
  0x96   :  { %v212_v61 = vadd.f32 1e-06, %v180_v57  ;;  %v136_v62 = vpop.xlane.xlu1 %135  ;;  %v1260_v57 = vld [vmem:[%s1507_s1] ss:$0 sm:$0xff] }
  0x97   :  { %v88_v63 = vpop.xlane.xlu0 %87  ;;  %904 = vrsqrt.f32 %v228_v60  ;;  %v197_v5 = vmul.f32 0.03125, %v136_v62 }
  0x98   :  { %v181_v7 = vmul.f32 0.03125, %v88_v63  ;;  %906 = vrsqrt.f32 %v212_v61 }
  0x99   :  { %v229_v10 = vadd.f32 1e-06, %v197_v5 }
  0x9a   :  { %v213_v11 = vadd.f32 1e-06, %v181_v7  ;;  %v94_v12 = vpop.xlane.xlu1 %93 }
  0x9b   :  { %v91_v15 = vpop.xlane.xlu0 %90  ;;  %908 = vrsqrt.f32 %v229_v10  ;;  %v183_v18 = vmul.f32 0.03125, %v94_v12 }
  0x9c   :  { %v182_v19 = vmul.f32 0.03125, %v91_v15  ;;  %910 = vrsqrt.f32 %v213_v11 }
  0x9d   :  { %v215_v20 = vadd.f32 1e-06, %v183_v18 }
  0x9e   :  { %v214_v21 = vadd.f32 1e-06, %v182_v19  ;;  %v142_v26 = vpop.xlane.xlu1 %141 }
  0x9f   :  { %v139_v27 = vpop.xlane.xlu0 %138  ;;  %912 = vrsqrt.f32 %v215_v20  ;;  %v199_v30 = vmul.f32 0.03125, %v142_v26 }
  0xa0   :  { %v198_v31 = vmul.f32 0.03125, %v139_v27  ;;  %914 = vrsqrt.f32 %v214_v21 }
  0xa1   :  { %v905_v36 = vpop.eup %904  ;;  %v231_v37 = vadd.f32 1e-06, %v199_v30 }
  0xa2   :  { %v230_v38 = vadd.f32 1e-06, %v198_v31  ;;  %v907_v39 = vpop.eup %906  ;;  %v100_v44 = vpop.xlane.xlu1 %99  ;;  %v292_v50 = vmul.f32 %v905_v36, %v996_v0 }
  0xa3   :  { %v97_v45 = vpop.xlane.xlu0 %96  ;;  %916 = vrsqrt.f32 %v231_v37  ;;  %v185_v48 = vmul.f32 0.03125, %v100_v44  ;;  %v276_v56 = vmul.f32 %v907_v39, %v1001_v1 }
  0xa4   :  { %v184_v49 = vmul.f32 0.03125, %v97_v45  ;;  %918 = vrsqrt.f32 %v230_v38  ;;  %v331_v10 = vmul.f32 %v1260_v57, %v292_v50 }
  0xa5   :  { %v909_v51 = vpop.eup %908  ;;  %v217_v54 = vadd.f32 1e-06, %v185_v48  ;;  %v315_v18 = vmul.f32 %v1260_v57, %v276_v56 }
  0xa6   :  { %v216_v55 = vadd.f32 1e-06, %v184_v49  ;;  %v911_v60 = vpop.eup %910  ;;  %v148_v61 = vpop.xlane.xlu1 %147  ;;  %v293_v63 = vmul.f32 %v909_v51, %v1006_v2 }
  0xa7   :  { %v145_v62 = vpop.xlane.xlu0 %144  ;;  %920 = vrsqrt.f32 %v217_v54  ;;  %v201_v5 = vmul.f32 0.03125, %v148_v61  ;;  %v277_v0 = vmul.f32 %v911_v60, %v1017_v6 }
  0xa8   :  { %v200_v7 = vmul.f32 0.03125, %v145_v62  ;;  %922 = vrsqrt.f32 %v216_v55  ;;  %v332_v1 = vmul.f32 %v1260_v57, %v293_v63 }
  0xa9   :  { %v913_v11 = vpop.eup %912  ;;  %v233_v12 = vadd.f32 1e-06, %v201_v5  ;;  %v316_v19 = vmul.f32 %v1260_v57, %v277_v0 }
  0xaa   :  { %v232_v15 = vadd.f32 1e-06, %v200_v7  ;;  %v915_v20 = vpop.eup %914  ;;  %v106_v21 = vpop.xlane.xlu1 %105  ;;  %v355_v26 = vpack.c.bf16 %v332_v1, %v331_v10  ;;  %v279_v27 = vmul.f32 %v913_v11, %v1024_v8 }
  0xab   :  { %v103_v2 = vpop.xlane.xlu0 %102  ;;  %924 = vrsqrt.f32 %v233_v12  ;;  %v187_v6 = vmul.f32 0.03125, %v106_v21  ;;  %v347_v31 = vpack.c.bf16 %v316_v19, %v315_v18  ;;  %v278_v36 = vmul.f32 %v915_v20, %v1029_v9 }
  0xac   :  { %v186_v30 = vmul.f32 0.03125, %v103_v2  ;;  %926 = vrsqrt.f32 %v232_v15  ;;  %882 = vmatprep.mubr.msk.bf16.mxu1 %vm82_vm0, %v355_v26  ;;  %v318_v37 = vmul.f32 %v1260_v57, %v279_v27 }
  0xad   :  { %v917_v38 = vpop.eup %916  ;;  %v219_v39 = vadd.f32 1e-06, %v187_v6  ;;  %866 = vmatprep.mubr.msk.bf16.mxu0 %vm82_vm0, %v347_v31  ;;  %v317_v8 = vmul.f32 %v1260_v57, %v278_v36 }
  0xae   :  { %v218_v44 = vadd.f32 1e-06, %v186_v30  ;;  %v919_v45 = vpop.eup %918  ;;  %v154_v48 = vpop.xlane.xlu1 %153  ;;  %v295_v50 = vmul.f32 %v917_v38, %v1042_v16 }
  0xaf   :  { %v151_v49 = vpop.xlane.xlu0 %150  ;;  %928 = vrsqrt.f32 %v219_v39  ;;  %v203_v51 = vmul.f32 0.03125, %v154_v48  ;;  %v294_v55 = vmul.f32 %v919_v45, %v1047_v17  ;;  %v348_v9 = vpack.c.bf16 %v318_v37, %v317_v8 }
  0xb0   :  { %v202_v54 = vmul.f32 0.03125, %v151_v49  ;;  %930 = vrsqrt.f32 %v218_v44  ;;  %v334_v56 = vmul.f32 %v1260_v57, %v295_v50 }
  0xb1   :  { %v921_v60 = vpop.eup %920  ;;  %v235_v61 = vadd.f32 1e-06, %v203_v51  ;;  %v333_v63 = vmul.f32 %v1260_v57, %v294_v55  ;;  %867 = vmatmul.mubr.msk.bf16.vlgmr.msra.gmra.mrb[0].mxu0 %vm82_vm0, %v348_v9 }
  0xb2   :  { %v234_v62 = vadd.f32 1e-06, %v202_v54  ;;  %v923_v5 = vpop.eup %922  ;;  %v112_v7 = vpop.xlane.xlu1 %111  ;;  %v281_v16 = vmul.f32 %v921_v60, %v1058_v22 }
  0xb3   :  { %v109_v0 = vpop.xlane.xlu0 %108  ;;  %932 = vrsqrt.f32 %v235_v61  ;;  %v189_v10 = vmul.f32 0.03125, %v112_v7  ;;  %v356_v17 = vpack.c.bf16 %v334_v56, %v333_v63  ;;  %v280_v11 = vmul.f32 %v923_v5, %v1063_v23 }
  0xb4   :  { %v188_v1 = vmul.f32 0.03125, %v109_v0  ;;  %934 = vrsqrt.f32 %v234_v62  ;;  %v320_v12 = vmul.f32 %v1260_v57, %v281_v16 }
  0xb5   :  { %v925_v15 = vpop.eup %924  ;;  %v221_v18 = vadd.f32 1e-06, %v189_v10  ;;  %883 = vmatmul.mubr.msk.bf16.vlgmr.msra.gmra.mrb[0].mxu1 %vm82_vm0, %v356_v17  ;;  %v319_v26 = vmul.f32 %v1260_v57, %v280_v11 }
  0xb6   :  { %v220_v19 = vadd.f32 1e-06, %v188_v1  ;;  %v927_v20 = vpop.eup %926  ;;  %v160_v21 = vpop.xlane.xlu1 %159  ;;  %v297_v22 = vmul.f32 %v925_v15, %v1074_v28 }
  0xb7   :  { %v157_v2 = vpop.xlane.xlu0 %156  ;;  %936 = vrsqrt.f32 %v221_v18  ;;  %v205_v27 = vmul.f32 0.03125, %v160_v21  ;;  %v296_v30 = vmul.f32 %v927_v20, %v1079_v29  ;;  %v349_v23 = vpack.c.bf16 %v320_v12, %v319_v26 }
  0xb8   :  { %v204_v6 = vmul.f32 0.03125, %v157_v2  ;;  %938 = vrsqrt.f32 %v220_v19  ;;  %v336_v31 = vmul.f32 %v1260_v57, %v297_v22 }
  0xb9   :  { %v929_v36 = vpop.eup %928  ;;  %v237_v37 = vadd.f32 1e-06, %v205_v27  ;;  %v335_v39 = vmul.f32 %v1260_v57, %v296_v30  ;;  %870 = vmatprep.mubr.msk.bf16.mxu0 %vm82_vm0, %v349_v23 }
  0xba   :  { %v236_v38 = vadd.f32 1e-06, %v204_v6  ;;  %v931_v44 = vpop.eup %930  ;;  %v118_v45 = vpop.xlane.xlu1 %117  ;;  %v283_v28 = vmul.f32 %v929_v36, %v1090_v34 }
  0xbb   :  { %v115_v48 = vpop.xlane.xlu0 %114  ;;  %940 = vrsqrt.f32 %v237_v37  ;;  %v191_v49 = vmul.f32 0.03125, %v118_v45  ;;  %v357_v29 = vpack.c.bf16 %v336_v31, %v335_v39  ;;  %v282_v50 = vmul.f32 %v931_v44, %v1095_v35 }
  0xbc   :  { %v190_v8 = vmul.f32 0.03125, %v115_v48  ;;  %942 = vrsqrt.f32 %v236_v38  ;;  %v322_v51 = vmul.f32 %v1260_v57, %v283_v28 }
  0xbd   :  { %v933_v54 = vpop.eup %932  ;;  %v223_v55 = vadd.f32 1e-06, %v191_v49  ;;  %886 = vmatprep.mubr.msk.bf16.mxu1 %vm82_vm0, %v357_v29  ;;  %v321_v62 = vmul.f32 %v1260_v57, %v282_v50 }
  0xbe   :  { %v222_v9 = vadd.f32 1e-06, %v190_v8  ;;  %v935_v56 = vpop.eup %934  ;;  %v166_v60 = vpop.xlane.xlu1 %165  ;;  %v299_v34 = vmul.f32 %v933_v54, %v1106_v40 }
  0xbf   :  { %v163_v61 = vpop.xlane.xlu0 %162  ;;  %944 = vrsqrt.f32 %v223_v55  ;;  %v207_v63 = vmul.f32 0.03125, %v166_v60  ;;  %v298_v7 = vmul.f32 %v935_v56, %v1111_v41  ;;  %v350_v35 = vpack.c.bf16 %v322_v51, %v321_v62 }
  0xc0   :  { %v206_v5 = vmul.f32 0.03125, %v163_v61  ;;  %946 = vrsqrt.f32 %v222_v9  ;;  %v338_v0 = vmul.f32 %v1260_v57, %v299_v34 }
  0xc1   :  { %v937_v16 = vpop.eup %936  ;;  %v239_v10 = vadd.f32 1e-06, %v207_v63  ;;  %v337_v17 = vmul.f32 %v1260_v57, %v298_v7  ;;  %871 = vmatmul.mubr.msk.bf16.gmra.mrb[4].mxu0 %vm82_vm0, %v350_v35 }
  0xc2   :  { %v238_v1 = vadd.f32 1e-06, %v206_v5  ;;  %v939_v11 = vpop.eup %938  ;;  %v124_v12 = vpop.xlane.xlu1 %123  ;;  %v285_v40 = vmul.f32 %v937_v16, %v1122_v46 }
  0xc3   :  { %v121_v15 = vpop.xlane.xlu0 %120  ;;  %948 = vrsqrt.f32 %v239_v10  ;;  %v193_v18 = vmul.f32 0.03125, %v124_v12  ;;  %v358_v41 = vpack.c.bf16 %v338_v0, %v337_v17  ;;  %v284_v20 = vmul.f32 %v939_v11, %v1127_v47 }
  0xc4   :  { %v192_v19 = vmul.f32 0.03125, %v121_v15  ;;  %950 = vrsqrt.f32 %v238_v1  ;;  %v324_v21 = vmul.f32 %v1260_v57, %v285_v40 }
  0xc5   :  { %v941_v2 = vpop.eup %940  ;;  %v225_v26 = vadd.f32 1e-06, %v193_v18  ;;  %887 = vmatmul.mubr.msk.bf16.gmra.mrb[4].mxu1 %vm82_vm0, %v358_v41  ;;  %v323_v23 = vmul.f32 %v1260_v57, %v284_v20 }
  0xc6   :  { %v224_v22 = vadd.f32 1e-06, %v192_v19  ;;  %v943_v27 = vpop.eup %942  ;;  %v172_v6 = vpop.xlane.xlu1 %171  ;;  %v301_v46 = vmul.f32 %v941_v2, %v1138_v52 }
  0xc7   :  { %v169_v30 = vpop.xlane.xlu0 %168  ;;  %952 = vrsqrt.f32 %v225_v26  ;;  %v209_v31 = vmul.f32 0.03125, %v172_v6  ;;  %v300_v37 = vmul.f32 %v943_v27, %v1143_v53  ;;  %v351_v47 = vpack.c.bf16 %v324_v21, %v323_v23 }
  0xc8   :  { %v208_v36 = vmul.f32 0.03125, %v169_v30  ;;  %954 = vrsqrt.f32 %v224_v22  ;;  %v340_v38 = vmul.f32 %v1260_v57, %v301_v46 }
  0xc9   :  { %v945_v39 = vpop.eup %944  ;;  %v241_v44 = vadd.f32 1e-06, %v209_v31  ;;  %v339_v48 = vmul.f32 %v1260_v57, %v300_v37  ;;  %874 = vmatprep.mubr.msk.bf16.mxu0 %vm82_vm0, %v351_v47  ;;  %v1343_v37 = vld [vmem:[%s1508_s3] ss:$0 sm:$0xff] }
  0xca   :  { %v240_v45 = vadd.f32 1e-06, %v208_v36  ;;  %v947_v28 = vpop.eup %946  ;;  %v130_v49 = vpop.xlane.xlu1 %129  ;;  %v287_v52 = vmul.f32 %v945_v39, %v1154_v58 }
  0xcb   :  { %v127_v8 = vpop.xlane.xlu0 %126  ;;  %956 = vrsqrt.f32 %v241_v44  ;;  %v195_v29 = vmul.f32 0.03125, %v130_v49  ;;  %v359_v53 = vpack.c.bf16 %v340_v38, %v339_v48  ;;  %v286_v51 = vmul.f32 %v947_v28, %v1159_v59 }
  0xcc   :  { %v194_v50 = vmul.f32 0.03125, %v127_v8  ;;  %958 = vrsqrt.f32 %v240_v45  ;;  %v326_v54 = vmul.f32 %v1260_v57, %v287_v52 }
  0xcd   :  { %v949_v55 = vpop.eup %948  ;;  %v227_v9 = vadd.f32 1e-06, %v195_v29  ;;  %890 = vmatprep.mubr.msk.bf16.mxu1 %vm82_vm0, %v359_v53  ;;  %v325_v34 = vmul.f32 %v1260_v57, %v286_v51 }
  0xce   :  { %v226_v56 = vadd.f32 1e-06, %v194_v50  ;;  %v951_v60 = vpop.eup %950  ;;  %v178_v61 = vpop.xlane.xlu1 %177  ;;  %v303_v58 = vmul.f32 %v949_v55, %v1170_v3 }
  0xcf   :  { %v175_v62 = vpop.xlane.xlu0 %174  ;;  %960 = vrsqrt.f32 %v227_v9  ;;  %v211_v63 = vmul.f32 0.03125, %v178_v61  ;;  %v302_v7 = vmul.f32 %v951_v60, %v1175_v4  ;;  %v352_v59 = vpack.c.bf16 %v326_v54, %v325_v34 }
  0xd0   :  { %v210_v5 = vmul.f32 0.03125, %v175_v62  ;;  %962 = vrsqrt.f32 %v226_v56  ;;  %v342_v35 = vmul.f32 %v1260_v57, %v303_v58 }
  0xd1   :  { %v953_v0 = vpop.eup %952  ;;  %v243_v16 = vadd.f32 1e-06, %v211_v63  ;;  %v341_v1 = vmul.f32 %v1260_v57, %v302_v7  ;;  %875 = vmatmul.mubr.msk.bf16.gmra.mrb[8].mxu0 %vm82_vm0, %v352_v59 }
  0xd2   :  { %v242_v10 = vadd.f32 1e-06, %v210_v5  ;;  %v955_v17 = vpop.eup %954  ;;  %v289_v11 = vmul.f32 %v953_v0, %v1189_v13 }
  0xd3   :  { %964 = vrsqrt.f32 %v243_v16  ;;  %v360_v3 = vpack.c.bf16 %v342_v35, %v341_v1  ;;  %v288_v12 = vmul.f32 %v955_v17, %v1194_v14 }
  0xd4   :  { %966 = vrsqrt.f32 %v242_v10  ;;  %v328_v4 = vmul.f32 %v1260_v57, %v289_v11 }
  0xd5   :  { %v957_v15 = vpop.eup %956  ;;  %891 = vmatmul.mubr.msk.bf16.gmra.mrb[8].mxu1 %vm82_vm0, %v360_v3  ;;  %v327_v40 = vmul.f32 %v1260_v57, %v288_v12 }
  0xd6   :  { %v959_v18 = vpop.eup %958  ;;  %v305_v19 = vmul.f32 %v957_v15, %v1208_v24 }
  0xd7   :  { %v353_v41 = vpack.c.bf16 %v328_v4, %v327_v40  ;;  %v304_v20 = vmul.f32 %v959_v18, %v1213_v25 }
  0xd8   :  { %v344_v13 = vmul.f32 %v1260_v57, %v305_v19 }
  0xd9   :  { %v961_v21 = vpop.eup %960  ;;  %878 = vmatprep.mubr.msk.bf16.mxu0 %vm82_vm0, %v353_v41  ;;  %v343_v14 = vmul.f32 %v1260_v57, %v304_v20 }
  0xda   :  { %v963_v2 = vpop.eup %962  ;;  %v291_v26 = vmul.f32 %v961_v21, %v1224_v32 }
  0xdb   :  { %v361_v22 = vpack.c.bf16 %v344_v13, %v343_v14  ;;  %v290_v27 = vmul.f32 %v963_v2, %v1229_v33 }
  0xdc   :  { %v330_v6 = vmul.f32 %v1260_v57, %v291_v26 }
  0xdd   :  { %v965_v30 = vpop.eup %964  ;;  %894 = vmatprep.mubr.msk.bf16.mxu1 %vm82_vm0, %v361_v22  ;;  %v329_v24 = vmul.f32 %v1260_v57, %v290_v27 }
  0xde   :  { %v967_v25 = vpop.eup %966  ;;  %v307_v23 = vmul.f32 %v965_v30, %v1240_v42 }
  0xdf   :  { %v354_v46 = vpack.c.bf16 %v330_v6, %v329_v24  ;;  %v306_v31 = vmul.f32 %v967_v25, %v1245_v43 }
  0xe0   :  { %v346_v36 = vmul.f32 %v1260_v57, %v307_v23 }
  0xe1   :  { %879 = vmatmul.mubr.msk.bf16.gmra.mrb[12].mxu0 %vm82_vm0, %v354_v46  ;;  %v345_v32 = vmul.f32 %v1260_v57, %v306_v31 }
  0xe3   :  { %v362_v33 = vpack.c.bf16 %v346_v36, %v345_v32 }
  0xe5   :  { %895 = vmatmul.mubr.msk.bf16.gmra.mrb[12].mxu1 %vm82_vm0, %v362_v33 }
 0x184   :  { %v868_v47 = vpop.f32.mrb[0].mxu0 }
 0x185   :  { %v477_v42 = vadd.f32 %v868_v47, %v1343_v37  ;;  %v468_v38 = vpop.f32.mrb[1].mxu0 }
 0x186   :  { %v469_v43 = vadd.f32 %v1343_v37, %v468_v38  ;;  %v869_v39 = vpop.f32.mrb[2].mxu0 }
 0x187   :  { %v814_v44 = vpack.c.bf16 %v477_v42, %v477_v42  ;;  %v480_v45 = vadd.f32 %v869_v39, %v1343_v37  ;;  %v471_v57 = vpop.f32.mrb[3].mxu0 }
 0x188   :  { %v884_v48 = vpop.f32.mrb[0].mxu1  ;;  %v812_v28 = vpack.c.bf16 %v469_v43, %v469_v43  ;;  %v472_v49 = vadd.f32 %v1343_v37, %v471_v57 }
 0x189   :  { %v541_v8 = vadd.f32 %v884_v48, %v1343_v37  ;;  %v532_v52 = vpop.f32.mrb[1].mxu1  ;;  %726 = vst.msk [vmem:[%s1509_s4 + $0x8] sm:$0xf] %vm723_vm1, %v814_v44  ;;  %v815_v29 = vpack.c.bf16 %v480_v45, %v480_v45 }
 0x18a   :  { %v533_v50 = vadd.f32 %v1343_v37, %v532_v52  ;;  %v885_v53 = vpop.f32.mrb[2].mxu1  ;;  %724 = vst.msk [vmem:[%s1509_s4] sm:$0xf] %vm723_vm1, %v812_v28  ;;  %v813_v51 = vpack.c.bf16 %v472_v49, %v472_v49 }
 0x18b   :  { %v830_v54 = vpack.c.bf16 %v541_v8, %v541_v8  ;;  %v544_v55 = vadd.f32 %v885_v53, %v1343_v37  ;;  %v535_v9 = vpop.f32.mrb[3].mxu1  ;;  %727 = vst.msk [vmem:[%s1509_s4 + $0xc] sm:$0xf] %vm723_vm1, %v815_v29 }
 0x18c   :  { %v828_v56 = vpack.c.bf16 %v533_v50, %v533_v50  ;;  %v536_v60 = vadd.f32 %v1343_v37, %v535_v9  ;;  %725 = vst.msk [vmem:[%s1509_s4 + $0x4] sm:$0xf] %vm723_vm1, %v813_v51 }
 0x18d   :  { %742 = vst.msk [vmem:[%s1509_s4 + $0x48] sm:$0xf] %vm723_vm1, %v830_v54  ;;  %v831_v61 = vpack.c.bf16 %v544_v55, %v544_v55 }
 0x18e   :  { %740 = vst.msk [vmem:[%s1509_s4 + $0x40] sm:$0xf] %vm723_vm1, %v828_v56  ;;  %v829_v62 = vpack.c.bf16 %v536_v60, %v536_v60 }
 0x18f   :  { %743 = vst.msk [vmem:[%s1509_s4 + $0x4c] sm:$0xf] %vm723_vm1, %v831_v61 }
 0x190   :  { %741 = vst.msk [vmem:[%s1509_s4 + $0x44] sm:$0xf] %vm723_vm1, %v829_v62 }
 0x194   :  { %v872_v34 = vpop.f32.mrb[4].mxu0 }
 0x195   :  { %v493_v58 = vadd.f32 %v872_v34, %v1343_v37  ;;  %v484_v63 = vpop.f32.mrb[5].mxu0 }
 0x196   :  { %v485_v5 = vadd.f32 %v1343_v37, %v484_v63  ;;  %v873_v7 = vpop.f32.mrb[6].mxu0 }
 0x197   :  { %v818_v59 = vpack.c.bf16 %v493_v58, %v493_v58  ;;  %v496_v35 = vadd.f32 %v873_v7, %v1343_v37  ;;  %v487_v0 = vpop.f32.mrb[7].mxu0 }
 0x198   :  { %v888_v16 = vpop.f32.mrb[4].mxu1  ;;  %v816_v10 = vpack.c.bf16 %v485_v5, %v485_v5  ;;  %v488_v1 = vadd.f32 %v1343_v37, %v487_v0 }
 0x199   :  { %v557_v17 = vadd.f32 %v888_v16, %v1343_v37  ;;  %v548_v11 = vpop.f32.mrb[5].mxu1  ;;  %730 = vst.msk [vmem:[%s1509_s4 + $0x18] sm:$0xf] %vm723_vm1, %v818_v59  ;;  %v819_v3 = vpack.c.bf16 %v496_v35, %v496_v35 }
 0x19a   :  { %v549_v12 = vadd.f32 %v1343_v37, %v548_v11  ;;  %v889_v4 = vpop.f32.mrb[6].mxu1  ;;  %728 = vst.msk [vmem:[%s1509_s4 + $0x10] sm:$0xf] %vm723_vm1, %v816_v10  ;;  %v817_v15 = vpack.c.bf16 %v488_v1, %v488_v1 }
 0x19b   :  { %v834_v40 = vpack.c.bf16 %v557_v17, %v557_v17  ;;  %v560_v18 = vadd.f32 %v889_v4, %v1343_v37  ;;  %v551_v19 = vpop.f32.mrb[7].mxu1  ;;  %731 = vst.msk [vmem:[%s1509_s4 + $0x1c] sm:$0xf] %vm723_vm1, %v819_v3 }
 0x19c   :  { %v832_v41 = vpack.c.bf16 %v549_v12, %v549_v12  ;;  %v552_v20 = vadd.f32 %v1343_v37, %v551_v19  ;;  %729 = vst.msk [vmem:[%s1509_s4 + $0x14] sm:$0xf] %vm723_vm1, %v817_v15 }
 0x19d   :  { %746 = vst.msk [vmem:[%s1509_s4 + $0x58] sm:$0xf] %vm723_vm1, %v834_v40  ;;  %v835_v13 = vpack.c.bf16 %v560_v18, %v560_v18 }
 0x19e   :  { %744 = vst.msk [vmem:[%s1509_s4 + $0x50] sm:$0xf] %vm723_vm1, %v832_v41  ;;  %v833_v21 = vpack.c.bf16 %v552_v20, %v552_v20 }
 0x19f   :  { %747 = vst.msk [vmem:[%s1509_s4 + $0x5c] sm:$0xf] %vm723_vm1, %v835_v13 }
 0x1a0   :  { %745 = vst.msk [vmem:[%s1509_s4 + $0x54] sm:$0xf] %vm723_vm1, %v833_v21 }
 0x1a4   :  { %v876_v14 = vpop.f32.mrb[8].mxu0 }
 0x1a5   :  { %v509_v2 = vadd.f32 %v876_v14, %v1343_v37  ;;  %v500_v26 = vpop.f32.mrb[9].mxu0 }
 0x1a6   :  { %v501_v22 = vadd.f32 %v1343_v37, %v500_v26  ;;  %v877_v27 = vpop.f32.mrb[10].mxu0 }
 0x1a7   :  { %v822_v6 = vpack.c.bf16 %v509_v2, %v509_v2  ;;  %v512_v30 = vadd.f32 %v877_v27, %v1343_v37  ;;  %v503_v24 = vpop.f32.mrb[11].mxu0 }
 0x1a8   :  { %v892_v25 = vpop.f32.mrb[8].mxu1  ;;  %v820_v23 = vpack.c.bf16 %v501_v22, %v501_v22  ;;  %v504_v46 = vadd.f32 %v1343_v37, %v503_v24 }
 0x1a9   :  { %v573_v31 = vadd.f32 %v892_v25, %v1343_v37  ;;  %v564_v36 = vpop.f32.mrb[9].mxu1  ;;  %734 = vst.msk [vmem:[%s1509_s4 + $0x28] sm:$0xf] %vm723_vm1, %v822_v6  ;;  %v823_v32 = vpack.c.bf16 %v512_v30, %v512_v30 }
 0x1aa   :  { %v565_v33 = vadd.f32 %v1343_v37, %v564_v36  ;;  %v893_v47 = vpop.f32.mrb[10].mxu1  ;;  %732 = vst.msk [vmem:[%s1509_s4 + $0x20] sm:$0xf] %vm723_vm1, %v820_v23  ;;  %v821_v42 = vpack.c.bf16 %v504_v46, %v504_v46 }
 0x1ab   :  { %v838_v38 = vpack.c.bf16 %v573_v31, %v573_v31  ;;  %v576_v43 = vadd.f32 %v893_v47, %v1343_v37  ;;  %v567_v39 = vpop.f32.mrb[11].mxu1  ;;  %735 = vst.msk [vmem:[%s1509_s4 + $0x2c] sm:$0xf] %vm723_vm1, %v823_v32 }
 0x1ac   :  { %v836_v44 = vpack.c.bf16 %v565_v33, %v565_v33  ;;  %v568_v45 = vadd.f32 %v1343_v37, %v567_v39  ;;  %733 = vst.msk [vmem:[%s1509_s4 + $0x24] sm:$0xf] %vm723_vm1, %v821_v42 }
 0x1ad   :  { %750 = vst.msk [vmem:[%s1509_s4 + $0x68] sm:$0xf] %vm723_vm1, %v838_v38  ;;  %v839_v57 = vpack.c.bf16 %v576_v43, %v576_v43 }
 0x1ae   :  { %748 = vst.msk [vmem:[%s1509_s4 + $0x60] sm:$0xf] %vm723_vm1, %v836_v44  ;;  %v837_v48 = vpack.c.bf16 %v568_v45, %v568_v45 }
 0x1af   :  { %751 = vst.msk [vmem:[%s1509_s4 + $0x6c] sm:$0xf] %vm723_vm1, %v839_v57 }
 0x1b0   :  { %749 = vst.msk [vmem:[%s1509_s4 + $0x64] sm:$0xf] %vm723_vm1, %v837_v48 }
 0x1b4   :  { %v880_v28 = vpop.f32.mrb[12].mxu0 }
 0x1b5   :  { %v525_v49 = vadd.f32 %v880_v28, %v1343_v37  ;;  %v516_v8 = vpop.f32.mrb[13].mxu0 }
 0x1b6   :  { %v517_v52 = vadd.f32 %v1343_v37, %v516_v8  ;;  %v881_v29 = vpop.f32.mrb[14].mxu0 }
 0x1b7   :  { %v826_v50 = vpack.c.bf16 %v525_v49, %v525_v49  ;;  %v528_v53 = vadd.f32 %v881_v29, %v1343_v37  ;;  %v519_v51 = vpop.f32.mrb[15].mxu0 }
 0x1b8   :  { %v824_v54 = vpack.c.bf16 %v517_v52, %v517_v52  ;;  %v520_v55 = vadd.f32 %v1343_v37, %v519_v51  ;;  %v896_v9 = vpop.f32.mrb[12].mxu1 }
 0x1b9   :  { %738 = vst.msk [vmem:[%s1509_s4 + $0x38] sm:$0xf] %vm723_vm1, %v826_v50  ;;  %v827_v56 = vpack.c.bf16 %v528_v53, %v528_v53  ;;  %v589_v60 = vadd.f32 %v896_v9, %v1343_v37  ;;  %v580_v61 = vpop.f32.mrb[13].mxu1 }
 0x1ba   :  { %736 = vst.msk [vmem:[%s1509_s4 + $0x30] sm:$0xf] %vm723_vm1, %v824_v54  ;;  %v825_v62 = vpack.c.bf16 %v520_v55, %v520_v55  ;;  %v581_v34 = vadd.f32 %v1343_v37, %v580_v61  ;;  %v897_v58 = vpop.f32.mrb[14].mxu1 }
 0x1bb   :  { %739 = vst.msk [vmem:[%s1509_s4 + $0x3c] sm:$0xf] %vm723_vm1, %v827_v56  ;;  %v842_v63 = vpack.c.bf16 %v589_v60, %v589_v60  ;;  %v592_v5 = vadd.f32 %v897_v58, %v1343_v37  ;;  %v583_v7 = vpop.f32.mrb[15].mxu1 }
 0x1bc   :  { %737 = vst.msk [vmem:[%s1509_s4 + $0x34] sm:$0xf] %vm723_vm1, %v825_v62  ;;  %v840_v59 = vpack.c.bf16 %v581_v34, %v581_v34  ;;  %v584_v35 = vadd.f32 %v1343_v37, %v583_v7 }
 0x1bd   :  { %754 = vst.msk [vmem:[%s1509_s4 + $0x78] sm:$0xf] %vm723_vm1, %v842_v63  ;;  %v843_v0 = vpack.c.bf16 %v592_v5, %v592_v5 }
 0x1be   :  { %752 = vst.msk [vmem:[%s1509_s4 + $0x70] sm:$0xf] %vm723_vm1, %v840_v59  ;;  %v841_v16 = vpack.c.bf16 %v584_v35, %v584_v35 }
 0x1bf   :  { %755 = vst.msk [vmem:[%s1509_s4 + $0x7c] sm:$0xf] %vm723_vm1, %v843_v0 }
 0x1c0   :  { %753 = vst.msk [vmem:[%s1509_s4 + $0x74] sm:$0xf] %vm723_vm1, %v841_v16 }

</bundles_post_ra>
